<compile_context>
chip_gen: v5e
topology: v5e:2x2
jax: 0.10.0
libtpu: 0.0.40
codegen_flags: <defaults>
</compile_context>

<pallas_src>
import jax
import jax.numpy as jnp
from jax.experimental import pallas as pl
from jax.experimental.pallas import tpu as pltpu

IN_DIM = 69     # fc1.in_features
HID = 64        # num_units
OUT_DIM = 5     # fc3.out_features


def _round_up(x, m):
    return ((x + m - 1) // m) * m


def mlp_kernel(x_ref, w1_ref, b1_ref, w2_ref, b2_ref, w3_ref, b3_ref, o_ref):
    # Whole hot path fused: 3 MXU matmuls, f32 accumulation, f32 bias+ReLU
    # epilogues. HID=64 / K=69 underfill the MXU, but the kernel is HBM-bound
    # by ~an order of magnitude, so the math rides for free under memory stalls.
    x = x_ref[...]
    h1 = jnp.dot(x, w1_ref[...], preferred_element_type=jnp.float32) + b1_ref[...]
    h1 = jnp.maximum(h1, 0.0)
    h2 = jnp.dot(h1.astype(w2_ref.dtype), w2_ref[...],
                 preferred_element_type=jnp.float32) + b2_ref[...]
    h2 = jnp.maximum(h2, 0.0)
    y = jnp.dot(h2.astype(w3_ref.dtype), w3_ref[...],
                preferred_element_type=jnp.float32) + b3_ref[...]
    o_ref[...] = y.astype(o_ref.dtype)


def mlp_forward(x, params, *, tm=2048, compute_dtype=jnp.float32):
    """x: (B, IN_DIM) float32. Returns (B, OUT_DIM) float32."""
    w1, b1, w2, b2, w3, b3 = params
    B = x.shape[0]

    # Effective batch tile: multiple of 8 sublanes; shrink for tiny batches so
    # we don't allocate a huge tile for a handful of rows.
    tm = max(8, _round_up(min(tm, _round_up(B, 8)), 8))
    grid = (pl.cdiv(B, tm),)   # uneven trailing block handled by Pallas masking

    # Wrapper does dtype casts only -- no padding, no copies of x in f32 mode.
    # (On v5e, prefer compute_dtype=bf16 only if the producer already emits
    # bf16 or the cast fuses into an existing pass.)
    x_c = x.astype(compute_dtype)
    w1_c = w1.astype(compute_dtype)
    w2_c = w2.astype(compute_dtype)
    w3_c = w3.astype(compute_dtype)
    # Biases stay f32 so the bias+ReLU epilogue is f32 everywhere.
    b1_c = b1.astype(jnp.float32)
    b2_c = b2.astype(jnp.float32)
    b3_c = b3.astype(jnp.float32)

    rep = lambda shape: pl.BlockSpec(shape, lambda i: (0, 0))  # resident weights

    out = pl.pallas_call(
        mlp_kernel,
        out_shape=jax.ShapeDtypeStruct((B, OUT_DIM), jnp.float32),
        grid_spec=pltpu.PrefetchScalarGridSpec(
            num_scalar_prefetch=0,
            grid=grid,
            in_specs=[
                pl.BlockSpec((tm, IN_DIM), lambda i: (i, 0)),  # x tile (streamed)
                rep((IN_DIM, HID)),                            # w1 (69, 64)
                rep((1, HID)),                                 # b1
                rep((HID, HID)),                               # w2
                rep((1, HID)),                                 # b2
                rep((HID, OUT_DIM)),                           # w3 (64, 5)
                rep((1, OUT_DIM)),                             # b3
            ],
            out_specs=pl.BlockSpec((tm, OUT_DIM), lambda i: (i, 0)),  # true width
        ),
        compiler_params=pltpu.CompilerParams(
            dimension_semantics=("parallel",),     # megacore-shardable batch axis
            vmem_limit_bytes=32 * 1024 * 1024,     # safe on v5e/v6e/v7x at tm<=4096
        ),
    )(x_c, w1_c, b1_c, w2_c, b2_c, w3_c, b3_c)

    return out


def init_params(key):
    """Deterministic init mimicking torch nn.Linear uniform(-1/sqrt(fan_in), +)."""
    ks = jax.random.split(key, 6)

    def lin(kw, kb, fan_in, fan_out):
        bound = 1.0 / jnp.sqrt(jnp.float32(fan_in))
        w = jax.random.uniform(kw, (fan_in, fan_out), jnp.float32, -bound, bound)
        b = jax.random.uniform(kb, (1, fan_out), jnp.float32, -bound, bound)
        return w, b

    w1, b1 = lin(ks[0], ks[1], IN_DIM, HID)
    w2, b2 = lin(ks[2], ks[3], HID, HID)
    w3, b3 = lin(ks[4], ks[5], HID, OUT_DIM)
    return (w1, b1, w2, b2, w3, b3)


def mlp_reference(x, params):
    w1, b1, w2, b2, w3, b3 = params
    h1 = jnp.maximum(x @ w1 + b1, 0.0)
    h2 = jnp.maximum(h1 @ w2 + b2, 0.0)
    return h2 @ w3 + b3


if __name__ == "__main__":
    key = jax.random.PRNGKey(0)
    kx, kp = jax.random.split(key)
    params = init_params(kp)

    # (B, tm) cases:
    #   (16, default)  -> single block, exact fit
    #   (13, default)  -> single uneven block (B % 8 != 0, masked trailing rows)
    #   (200, 64)      -> multi-block grid with uneven trailing block
    for B, tm in ((16, 2048), (13, 2048), (200, 64)):
        x = jax.random.normal(jax.random.fold_in(kx, B), (B, IN_DIM), dtype=jnp.float32)
        ref = mlp_reference(x, params)

        out = jax.block_until_ready(mlp_forward(x, params, tm=tm))
        assert out.shape == (B, OUT_DIM)
        assert jnp.allclose(out, ref, atol=1e-5, rtol=1e-5), "f32 mismatch vs reference"

        out_bf16 = jax.block_until_ready(
            mlp_forward(x, params, tm=tm, compute_dtype=jnp.bfloat16))
        assert out_bf16.shape == (B, OUT_DIM)
        assert jnp.allclose(out_bf16, ref, atol=5e-2, rtol=5e-2), "bf16 mismatch vs reference"

    print("KERNEL_OK")
</pallas_src>

<mosaic_0001>
module attributes {stable_mosaic.version = 11 : i64} {
  func.func @mlp_kernel(%arg0: i32, %arg1: memref<16x69xf32, #tpu.memory_space<vmem>>, %arg2: memref<69x64xf32, #tpu.memory_space<vmem>>, %arg3: memref<1x64xf32, #tpu.memory_space<vmem>>, %arg4: memref<64x64xf32, #tpu.memory_space<vmem>>, %arg5: memref<1x64xf32, #tpu.memory_space<vmem>>, %arg6: memref<64x5xf32, #tpu.memory_space<vmem>>, %arg7: memref<1x5xf32, #tpu.memory_space<vmem>>, %arg8: memref<16x5xf32, #tpu.memory_space<vmem>>) attributes {dimension_semantics = [#tpu.dimension_semantics<parallel>], iteration_bounds = array<i64: 1>, scalar_prefetch = 0 : i64, scratch_operands = 0 : i64, tpu.core_type = #tpu.core_type<tc>, window_params = [{transform_indices = @transform_0, window_bounds = array<i64: 16, 69>}, {pipeline_mode = #tpu.pipeline_mode<synchronous>, transform_indices = @transform_1, window_bounds = array<i64: 69, 64>}, {pipeline_mode = #tpu.pipeline_mode<synchronous>, transform_indices = @transform_2, window_bounds = array<i64: 1, 64>}, {pipeline_mode = #tpu.pipeline_mode<synchronous>, transform_indices = @transform_3, window_bounds = array<i64: 64, 64>}, {pipeline_mode = #tpu.pipeline_mode<synchronous>, transform_indices = @transform_4, window_bounds = array<i64: 1, 64>}, {pipeline_mode = #tpu.pipeline_mode<synchronous>, transform_indices = @transform_5, window_bounds = array<i64: 64, 5>}, {pipeline_mode = #tpu.pipeline_mode<synchronous>, transform_indices = @transform_6, window_bounds = array<i64: 1, 5>}, {transform_indices = @transform_7, window_bounds = array<i64: 16, 5>}]} {
    %c0 = arith.constant 0 : index
    %c0_0 = arith.constant 0 : index
    %0 = vector.load %arg1[%c0, %c0_0] : memref<16x69xf32, #tpu.memory_space<vmem>>, vector<16x69xf32>
    %c0_1 = arith.constant 0 : index
    %c0_2 = arith.constant 0 : index
    %1 = vector.load %arg2[%c0_1, %c0_2] : memref<69x64xf32, #tpu.memory_space<vmem>>, vector<69x64xf32>
    %cst = arith.constant dense<0.000000e+00> : vector<16x64xf32>
    %2 = tpu.matmul %0, %1, %cst {dimension_numbers = #tpu.dot_dimension_numbers<[1], [0], [0], [1], [0, 0, 1, 1], [], []>} : vector<16x69xf32>, vector<69x64xf32>, vector<16x64xf32> -> vector<16x64xf32>
    %c0_3 = arith.constant 0 : index
    %c0_4 = arith.constant 0 : index
    %3 = vector.load %arg3[%c0_3, %c0_4] : memref<1x64xf32, #tpu.memory_space<vmem>>, vector<1x64xf32>
    %4 = vector.broadcast %3 : vector<1x64xf32> to vector<16x64xf32>
    %5 = arith.addf %2, %4 : vector<16x64xf32>
    %cst_5 = arith.constant 0.000000e+00 : f32
    %6 = vector.broadcast %cst_5 : f32 to vector<16x64xf32>
    %7 = arith.maximumf %5, %6 : vector<16x64xf32>
    %c0_6 = arith.constant 0 : index
    %c0_7 = arith.constant 0 : index
    %8 = vector.load %arg4[%c0_6, %c0_7] : memref<64x64xf32, #tpu.memory_space<vmem>>, vector<64x64xf32>
    %cst_8 = arith.constant dense<0.000000e+00> : vector<16x64xf32>
    %9 = tpu.matmul %7, %8, %cst_8 {dimension_numbers = #tpu.dot_dimension_numbers<[1], [0], [0], [1], [0, 0, 1, 1], [], []>} : vector<16x64xf32>, vector<64x64xf32>, vector<16x64xf32> -> vector<16x64xf32>
    %c0_9 = arith.constant 0 : index
    %c0_10 = arith.constant 0 : index
    %10 = vector.load %arg5[%c0_9, %c0_10] : memref<1x64xf32, #tpu.memory_space<vmem>>, vector<1x64xf32>
    %11 = vector.broadcast %10 : vector<1x64xf32> to vector<16x64xf32>
    %12 = arith.addf %9, %11 : vector<16x64xf32>
    %cst_11 = arith.constant 0.000000e+00 : f32
    %13 = vector.broadcast %cst_11 : f32 to vector<16x64xf32>
    %14 = arith.maximumf %12, %13 : vector<16x64xf32>
    %c0_12 = arith.constant 0 : index
    %c0_13 = arith.constant 0 : index
    %15 = vector.load %arg6[%c0_12, %c0_13] : memref<64x5xf32, #tpu.memory_space<vmem>>, vector<64x5xf32>
    %cst_14 = arith.constant dense<0.000000e+00> : vector<16x5xf32>
    %16 = tpu.matmul %14, %15, %cst_14 {dimension_numbers = #tpu.dot_dimension_numbers<[1], [0], [0], [1], [0, 0, 1, 1], [], []>} : vector<16x64xf32>, vector<64x5xf32>, vector<16x5xf32> -> vector<16x5xf32>
    %c0_15 = arith.constant 0 : index
    %c0_16 = arith.constant 0 : index
    %17 = vector.load %arg7[%c0_15, %c0_16] : memref<1x5xf32, #tpu.memory_space<vmem>>, vector<1x5xf32>
    %18 = vector.broadcast %17 : vector<1x5xf32> to vector<16x5xf32>
    %19 = arith.addf %16, %18 : vector<16x5xf32>
    %c0_17 = arith.constant 0 : index
    %c0_18 = arith.constant 0 : index
    %20 = vector.load %arg8[%c0_17, %c0_18] : memref<16x5xf32, #tpu.memory_space<vmem>>, vector<16x5xf32>
    tpu.vector_store %arg8[%c0_17, %c0_18], %19 {strides = array<i32>} : memref<16x5xf32, #tpu.memory_space<vmem>>, vector<16x5xf32>,
    return
  }
  func.func @transform_0(%arg0: i32) -> (i32, i32) {
    %c0_i32 = arith.constant 0 : i32
    %c0_i32_0 = arith.constant 0 : i32
    return %arg0, %c0_i32 : i32, i32
  }
  func.func @transform_1(%arg0: i32) -> (i32, i32) {
    %c0_i32 = arith.constant 0 : i32
    %c0_i32_0 = arith.constant 0 : i32
    %c0_i32_1 = arith.constant 0 : i32
    return %c0_i32, %c0_i32_0 : i32, i32
  }
  func.func @transform_2(%arg0: i32) -> (i32, i32) {
    %c0_i32 = arith.constant 0 : i32
    %c0_i32_0 = arith.constant 0 : i32
    %c0_i32_1 = arith.constant 0 : i32
    return %c0_i32, %c0_i32_0 : i32, i32
  }
  func.func @transform_3(%arg0: i32) -> (i32, i32) {
    %c0_i32 = arith.constant 0 : i32
    %c0_i32_0 = arith.constant 0 : i32
    %c0_i32_1 = arith.constant 0 : i32
    return %c0_i32, %c0_i32_0 : i32, i32
  }
  func.func @transform_4(%arg0: i32) -> (i32, i32) {
    %c0_i32 = arith.constant 0 : i32
    %c0_i32_0 = arith.constant 0 : i32
    %c0_i32_1 = arith.constant 0 : i32
    return %c0_i32, %c0_i32_0 : i32, i32
  }
  func.func @transform_5(%arg0: i32) -> (i32, i32) {
    %c0_i32 = arith.constant 0 : i32
    %c0_i32_0 = arith.constant 0 : i32
    %c0_i32_1 = arith.constant 0 : i32
    return %c0_i32, %c0_i32_0 : i32, i32
  }
  func.func @transform_6(%arg0: i32) -> (i32, i32) {
    %c0_i32 = arith.constant 0 : i32
    %c0_i32_0 = arith.constant 0 : i32
    %c0_i32_1 = arith.constant 0 : i32
    return %c0_i32, %c0_i32_0 : i32, i32
  }
  func.func @transform_7(%arg0: i32) -> (i32, i32) {
    %c0_i32 = arith.constant 0 : i32
    %c0_i32_0 = arith.constant 0 : i32
    return %arg0, %c0_i32 : i32, i32
  }
}

</mosaic_0001>

<bundles_post_ra>
// kernel: tpu_custom_call.1
= control target key start
LH: loop header
LB: loop body
LE: loop exit
PB: predicated region body
PF: predicated region fallthrough
CT: control target
= control target key end

     0   :  { %vm48_vm0 = vcmask 1044480   ;;  %vm41_vm1 = vcmask 564224   ;;  %vm89_vm2 = vcmask 523264   ;;  %vm162_vm3 = vcmask 39936   ;;  %s328_s1 = inlined_call_operand.vmem [shape: f32[69,64], index: 1, kind: input, shape index: {}]   ;;  %s329_s3 = inlined_call_operand.vmem [shape: f32[64,64], index: 3, kind: input, shape index: {}]   ;;  %s330_s2 = inlined_call_operand.vmem [shape: f32[1,64], index: 2, kind: input, shape index: {}]   ;;  %s331_s0 = inlined_call_operand.vmem [shape: f32[16,69], index: 0, kind: input, shape index: {}]   ;;  %s332_s4 = inlined_call_operand.vmem [shape: f32[1,64], index: 4, kind: input, shape index: {}]   ;;  %s333_s5 = inlined_call_operand.vmem [shape: f32[64,5], index: 5, kind: input, shape index: {}]   ;;  %s334_s6 = inlined_call_operand.vmem [shape: f32[1,5], index: 6, kind: input, shape index: {}]   ;;  %s335_s7 = inlined_call_operand.vmem [shape: f32[16,5], index: 7, kind: output, shape index: {}]  }
   0x1   :  { %v36_v0 = vld [vmem:[%s328_s1 + $0x40] sm:$0x1f]  ;;  %v35_v1 = vld [vmem:[%s328_s1 + $0x38] sm:$0xff]  ;;  %v34_v2 = vld [vmem:[%s328_s1 + $0x30] sm:$0xff] }
   0x2   :  { %169 = vmatpush.msk.msra.mxu0 %vm48_vm0, %v36_v0  ;;  %176 = vmatpush.msk.msra.mxu3 %vm48_vm0, %v36_v0  ;;  %v84_v3 = vld [vmem:[%s329_s3 + $0x38] sm:$0xff]  ;;  %v33_v4 = vld [vmem:[%s328_s1 + $0x28] sm:$0xff]  ;;  %v83_v5 = vld [vmem:[%s329_s3 + $0x30] sm:$0xff] }
   0x3   :  { %104 = vmatpush.msra.mxu1 %v84_v3  ;;  %v82_v6 = vld [vmem:[%s329_s3 + $0x28] sm:$0xff]  ;;  %v32_v7 = vld [vmem:[%s328_s1 + $0x20] sm:$0xff]  ;;  %v31_v9 = vld [vmem:[%s328_s1 + $0x18] sm:$0xff] }
   0x4   :  { %60 = vmatpush.msra.mxu0 %v35_v1  ;;  %177 = vmatpush.msra.mxu3 %v35_v1  ;;  %v81_v8 = vld [vmem:[%s329_s3 + $0x20] sm:$0xff]  ;;  %v80_v10 = vld [vmem:[%s329_s3 + $0x18] sm:$0xff]  ;;  %v30_v11 = vld [vmem:[%s328_s1 + $0x10] sm:$0xff] }
   0x5   :  { %105 = vmatpush.msra.mxu1 %v83_v5  ;;  %v29_v12 = vld [vmem:[%s328_s1 + $0x8] sm:$0xff]  ;;  %v28_v13 = vld [vmem:[%s328_s1] sm:$0xff]  ;;  %v79_v16 = vld [vmem:[%s329_s3 + $0x10] sm:$0xff] }
   0x6   :  { %61 = vmatpush.msra.mxu0 %v34_v2  ;;  %178 = vmatpush.msra.mxu3 %v34_v2  ;;  %v26_v14 = vld [vmem:[%s331_s0] sm:$0xff]  ;;  %v27_v15 = vld [vmem:[%s331_s0 + $0x8] sm:$0xff]  ;;  %v128_v19 = vld [vmem:[%s333_s5 + $0x38] sm:$0xff] }
   0x7   :  { %106 = vmatpush.msra.mxu1 %v82_v6  ;;  %v78_v17 = vld [vmem:[%s329_s3 + $0x8] sm:$0xff]  ;;  %v77_v18 = vld [vmem:[%s329_s3] sm:$0xff]  ;;  %v127_v20 = vld [vmem:[%s333_s5 + $0x30] sm:$0xff]  ;;  %147 = vmatpush.msra.mxu2 %v128_v19 }
   0x8   :  { %62 = vmatpush.msra.mxu0 %v33_v4  ;;  %179 = vmatpush.msra.mxu3 %v33_v4  ;;  %v126_v21 = vld [vmem:[%s333_s5 + $0x28] sm:$0xff]  ;;  %v125_v22 = vld [vmem:[%s333_s5 + $0x20] sm:$0xff]  ;;  %v124_v23 = vld [vmem:[%s333_s5 + $0x18] sm:$0xff] }
   0x9   :  { %107 = vmatpush.msra.mxu1 %v81_v8  ;;  %148 = vmatpush.msra.mxu2 %v127_v20  ;;  %v185_v24 = vld [vmem:[%s330_s2] ss:$0 sm:$0xff]  ;;  %v123_v31 = vld [vmem:[%s333_s5 + $0x10] sm:$0xff]  ;;  %v122_v32 = vld [vmem:[%s333_s5 + $0x8] sm:$0xff] }
   0xa   :  { %63 = vmatpush.msra.mxu0 %v32_v7  ;;  %180 = vmatpush.msra.mxu3 %v32_v7  ;;  %v121_v33 = vld [vmem:[%s333_s5] sm:$0xff] }
   0xb   :  { %108 = vmatpush.msra.mxu1 %v80_v10  ;;  %149 = vmatpush.msra.mxu2 %v126_v21  ;;  %v186_v34 = vld [vmem:[%s332_s4] ss:$0 sm:$0xff] }
   0xc   :  { %64 = vmatpush.msra.mxu0 %v31_v9  ;;  %181 = vmatpush.msra.mxu3 %v31_v9  ;;  %v187_v41 = vld [vmem:[%s334_s6] ss:$0 sm:$0xff] }
   0xd   :  { %109 = vmatpush.msra.mxu1 %v79_v16  ;;  %150 = vmatpush.msra.mxu2 %v125_v22 }
   0xe   :  { %65 = vmatpush.msra.mxu0 %v30_v11  ;;  %182 = vmatpush.msra.mxu3 %v30_v11 }
   0xf   :  { %110 = vmatpush.msra.mxu1 %v78_v17  ;;  %151 = vmatpush.msra.mxu2 %v124_v23 }
  0x10   :  { %66 = vmatpush.msra.mxu0 %v29_v12  ;;  %183 = vmatpush.msra.mxu3 %v29_v12 }
  0x11   :  { %111 = vmatpush.msra.mxu1 %v77_v18  ;;  %152 = vmatpush.msra.mxu2 %v123_v31 }
  0x12   :  { %67 = vmatpush.msra.mxu0 %v28_v13  ;;  %184 = vmatpush.msra.mxu3 %v28_v13 }
  0x13   :  { %170 = vmatmul.msk.f32.vlgmr.msra.gmra.mxu0 %vm41_vm1, %v26_v14  ;;  %171 = vmatmul.msk.f32.vlgmr.msra.gmra.mxu3 %vm41_vm1, %v27_v15 }
  0x14   :  { %153 = vmatpush.msra.mxu2 %v122_v32 }
  0x16   :  { %154 = vmatpush.msra.mxu2 %v121_v33 }
  0x90   :  { %v69_v25 = vpop.f32.mrf.mxu0 }
  0x91   :  { %v70_v26 = vadd.f32 %v185_v24, %v69_v25 }
  0x93   :  { %v75_v27 = vmax.f32 %v70_v26, 0.0 }
  0x95   :  { %172 = vmatmul.msk.f32.vlgmr.msra.gmra.mxu1 %vm89_vm2, %v75_v27 }
  0x96   :  { %v72_v28 = vpop.f32.mrf.mxu3 }
  0x97   :  { %v73_v29 = vadd.f32 %v185_v24, %v72_v28 }
  0x99   :  { %v76_v30 = vmax.f32 %v73_v29, 0.0 }
  0x9d   :  { %173 = vmatmul.msk.f32.gmra.mxu1 %vm89_vm2, %v76_v30 }
 0x112   :  { %v113_v35 = vpop.f32.mrf.mxu1 }
 0x113   :  { %v114_v36 = vadd.f32 %v186_v34, %v113_v35 }
 0x115   :  { %v119_v37 = vmax.f32 %v114_v36, 0.0 }
 0x117   :  { %174 = vmatmul.msk.f32.vlgmr.msra.gmra.mxu2 %vm89_vm2, %v119_v37 }
 0x11a   :  { %v116_v38 = vpop.f32.mrf.mxu1 }
 0x11b   :  { %v117_v39 = vadd.f32 %v186_v34, %v116_v38 }
 0x11d   :  { %v120_v40 = vmax.f32 %v117_v39, 0.0 }
 0x11f   :  { %175 = vmatmul.msk.f32.gmra.mxu2 %vm89_vm2, %v120_v40 }
 0x19a   :  { %v156_v42 = vpop.f32.mrf.mxu2 }
 0x19b   :  { %v157_v43 = vadd.f32 %v187_v41, %v156_v42 }
 0x19d   :  { %163 = vst.msk [vmem:[%s335_s7] sm:$0xff] %vm162_vm3, %v157_v43 }
 0x1a2   :  { %v159_v44 = vpop.f32.mrf.mxu2 }
 0x1a3   :  { %v160_v45 = vadd.f32 %v187_v41, %v159_v44 }
 0x1a5   :  { %164 = vst.msk [vmem:[%s335_s7 + $0x8] sm:$0xff] %vm162_vm3, %v160_v45 }

</bundles_post_ra>
